<compile_context>
chip_gen: v5e
topology: v5e:2x2
jax: 0.10.0
libtpu: 0.0.40
codegen_flags: <defaults>
</compile_context>

<pallas_src>
import functools

import jax
import jax.numpy as jnp
import numpy as np
from jax import lax
from jax.experimental import pallas as pl
from jax.experimental.pallas import tpu as pltpu


def _round_up(x, m):
    return ((x + m - 1) // m) * m


# ---------------------------------------------------------------------------
# Fused kernel: whole MLP on one (TB, obs_dim) batch tile.
# ---------------------------------------------------------------------------
def _make_fused_mlp_kernel(n_hidden):
    """Returns kernel(x_ref, *param_refs, o_ref) for `n_hidden` hidden layers."""

    def kernel(*refs):
        x_ref = refs[0]
        o_ref = refs[-1]
        p = refs[1:-1]

        x = x_ref[...].astype(jnp.float32)
        idx = 0
        for _ in range(n_hidden):
            w_ref, b_ref, g_ref, beta_ref = p[idx], p[idx + 1], p[idx + 2], p[idx + 3]
            idx += 4
            # f32 MXU matmul, f32 accumulation (MXU is far from the bottleneck
            # at these shapes; avoids per-step bf16 casts on the VPU and keeps
            # parity with the f32 PyTorch module).
            y = jnp.dot(x, w_ref[...], preferred_element_type=jnp.float32)
            y = y + b_ref[...]  # (1, N) bias broadcast
            # ELU (alpha=1.0).  exp on min(y,0) so the discarded positive
            # branch never produces inf (abs error vs expm1 ~1e-7 near 0).
            y = jnp.where(y > 0.0, y, jnp.exp(jnp.minimum(y, 0.0)) - 1.0)
            # One-pass LayerNorm over the true feature dim, eps = 1e-5:
            # var = E[y^2] - mean^2, gamma folded into the rsqrt scale.
            inv_n = 1.0 / y.shape[-1]
            s1 = jnp.sum(y, axis=-1, keepdims=True)
            s2 = jnp.sum(y * y, axis=-1, keepdims=True)
            mean = s1 * inv_n
            var = jnp.maximum(s2 * inv_n - mean * mean, 0.0)
            rstd = lax.rsqrt(var + 1e-5)
            x = (y - mean) * (rstd * g_ref[...]) + beta_ref[...]

        # Final Linear (lane-dense padded output; padded columns are exactly 0).
        w_ref, b_ref = p[idx], p[idx + 1]
        y = jnp.dot(x, w_ref[...], preferred_element_type=jnp.float32) + b_ref[...]
        o_ref[...] = y.astype(o_ref.dtype)

    return kernel


# ---------------------------------------------------------------------------
# Wrapper: one pallas_call for the whole network.
# ---------------------------------------------------------------------------
@functools.partial(jax.jit, static_argnames=("block_b",))
def actor_forward(observations, params, block_b=1024):
    B, obs_dim = observations.shape
    n_hidden = len(params) - 1
    action_dim = params[-1][0].shape[1]
    layer_dims = [obs_dim] + [p[0].shape[1] for p in params]

    # ---- batch tiling ------------------------------------------------------
    # * tile rows are a multiple of 8 (f32 sublane)
    # * >= 2 grid steps whenever there are >= 2 sublane tiles (v7x megacore)
    # * tile capped at block_b rows; batch pad kept to at most one 8-row tile
    bp8 = _round_up(B, 8)
    n_row_tiles = bp8 // 8
    tiles_per_step = max(1, min(block_b // 8, (n_row_tiles + 1) // 2))
    tb = tiles_per_step * 8
    b_pad = _round_up(bp8, tb)
    x = observations
    if b_pad != B:
        x = jnp.pad(x, ((0, b_pad - B), (0, 0)))

    # Lane-dense output: zero-pad the last layer to a multiple of 128 columns.
    out_pad = _round_up(action_dim, 128)
    w_out, b_out = params[-1]
    w_out_p = jnp.pad(w_out, ((0, 0), (0, out_pad - action_dim)))
    b_out_p = jnp.pad(b_out, ((0, 0), (0, out_pad - action_dim)))

    flat_params = []
    in_specs = [pl.BlockSpec((tb, obs_dim), lambda i: (i, 0))]

    def resident(a):
        # Whole-array block, always block (0, 0) -> DMA'd once, VMEM-resident.
        flat_params.append(a)
        in_specs.append(pl.BlockSpec(a.shape, lambda i: (0, 0)))

    for (w, b, g, beta) in params[:-1]:
        resident(w)
        resident(b)
        resident(g)
        resident(beta)
    resident(w_out_p)
    resident(b_out_p)

    # ---- explicit VMEM budget (bytes) --------------------------------------
    param_bytes = sum(int(a.size) * a.dtype.itemsize for a in flat_params)
    max_width = max(layer_dims[1:] + [out_pad])
    budget = (
        2 * tb * obs_dim * 4          # double-buffered input tiles
        + 2 * tb * out_pad * 4        # double-buffered output tiles
        + 2 * param_bytes             # resident params (double-buffered by default)
        + 6 * tb * max_width * 4      # compiler temporaries / spilled activations
        + (1 << 20)                   # slack
    )
    vmem_limit = int(min(100 << 20, max(32 << 20, 2 * budget)))

    # ---- advisory cost estimate --------------------------------------------
    flops = 2 * b_pad * sum(layer_dims[i] * layer_dims[i + 1]
                            for i in range(len(layer_dims) - 1))
    transcendentals = b_pad * (sum(layer_dims[1:-1]) + n_hidden)  # ELU exp + rsqrt
    bytes_accessed = b_pad * obs_dim * 4 + b_pad * out_pad * 4 + param_bytes

    out = pl.pallas_call(
        _make_fused_mlp_kernel(n_hidden),
        grid=(b_pad // tb,),
        in_specs=in_specs,
        out_specs=pl.BlockSpec((tb, out_pad), lambda i: (i, 0)),
        out_shape=jax.ShapeDtypeStruct((b_pad, out_pad), jnp.float32),
        compiler_params=pltpu.CompilerParams(
            dimension_semantics=("parallel",),
            vmem_limit_bytes=vmem_limit,
        ),
        cost_estimate=pl.CostEstimate(
            flops=int(flops),
            transcendentals=int(transcendentals),
            bytes_accessed=int(bytes_accessed),
        ),
    )(x, *flat_params)

    return out[:B, :action_dim]


# ---------------------------------------------------------------------------
# Parameter init (deterministic): orthogonal(gain=sqrt(2)) weights, zero bias,
# LayerNorm gamma=1 / beta=0 — mirrors model_utils.init in the PyTorch module.
# ---------------------------------------------------------------------------
def orthogonal_init(key, in_dim, out_dim, gain):
    # PyTorch orthogonal_ on a (out, in) matrix; we store as (in, out).
    a = jax.random.normal(key, (out_dim, in_dim), dtype=jnp.float32)
    if out_dim < in_dim:
        a = a.T
    q, r = jnp.linalg.qr(a)
    d = jnp.diagonal(r)
    q = q * jnp.where(d >= 0.0, 1.0, -1.0)   # guard against sign(0) == 0
    if out_dim < in_dim:
        q = q.T
    w_torch_layout = gain * q  # (out, in)
    return w_torch_layout.T    # (in, out)


def build_params(key, layer_dims):
    params = []
    gain = float(np.sqrt(2.0))
    n_layers = len(layer_dims) - 1
    keys = jax.random.split(key, n_layers)
    for i in range(n_layers):
        in_dim, out_dim = layer_dims[i], layer_dims[i + 1]
        w = orthogonal_init(keys[i], in_dim, out_dim, gain)
        b = jnp.zeros((1, out_dim), dtype=jnp.float32)
        if i < n_layers - 1:
            gamma = jnp.ones((1, out_dim), dtype=jnp.float32)
            beta = jnp.zeros((1, out_dim), dtype=jnp.float32)
            params.append((w, b, gamma, beta))
        else:
            params.append((w, b))
    return params


# ---------------------------------------------------------------------------
# Pure-JAX f32 reference (standard two-pass LayerNorm, expm1 ELU).
# ---------------------------------------------------------------------------
def actor_forward_ref(observations, params):
    x = observations.astype(jnp.float32)
    for w, b, g, beta in params[:-1]:
        y = jnp.dot(x, w, preferred_element_type=jnp.float32) + b
        y = jnp.where(y > 0.0, y, jnp.expm1(jnp.minimum(y, 0.0)))
        mean = jnp.mean(y, axis=-1, keepdims=True)
        var = jnp.mean((y - mean) ** 2, axis=-1, keepdims=True)
        x = (y - mean) * lax.rsqrt(var + 1e-5) * g + beta
    w, b = params[-1]
    return jnp.dot(x, w, preferred_element_type=jnp.float32) + b


if __name__ == "__main__":
    # Module-consistent small shapes:
    #   obs_dim=32, actor_mlp.units=[64, 64], activation='elu', action_dim=8
    obs_dim = 32
    action_dim = 8
    units = [64, 64]
    batch = 8

    layer_dims = [obs_dim] + units + [action_dim]

    key = jax.random.PRNGKey(0)
    k_params, k_obs = jax.random.split(key)
    params = build_params(k_params, layer_dims)
    observations = jax.random.normal(k_obs, (batch, obs_dim), dtype=jnp.float32)

    out = actor_forward(observations, params)
    out = jax.block_until_ready(out)

    ref = actor_forward_ref(observations, params)
    assert out.shape == (batch, action_dim)
    np.testing.assert_allclose(np.asarray(out), np.asarray(ref), rtol=1e-4, atol=1e-4)

    print("KERNEL_OK")
</pallas_src>

<mosaic_0001>
module attributes {stable_mosaic.version = 11 : i64} {
  func.func @kernel(%arg0: i32, %arg1: memref<8x32xf32, #tpu.memory_space<vmem>>, %arg2: memref<32x64xf32, #tpu.memory_space<vmem>>, %arg3: memref<1x64xf32, #tpu.memory_space<vmem>>, %arg4: memref<1x64xf32, #tpu.memory_space<vmem>>, %arg5: memref<1x64xf32, #tpu.memory_space<vmem>>, %arg6: memref<64x64xf32, #tpu.memory_space<vmem>>, %arg7: memref<1x64xf32, #tpu.memory_space<vmem>>, %arg8: memref<1x64xf32, #tpu.memory_space<vmem>>, %arg9: memref<1x64xf32, #tpu.memory_space<vmem>>, %arg10: memref<64x128xf32, #tpu.memory_space<vmem>>, %arg11: memref<1x128xf32, #tpu.memory_space<vmem>>, %arg12: memref<8x128xf32, #tpu.memory_space<vmem>>) attributes {dimension_semantics = [#tpu.dimension_semantics<parallel>], iteration_bounds = array<i64: 1>, scalar_prefetch = 0 : i64, scratch_operands = 0 : i64, tpu.core_type = #tpu.core_type<tc>, window_params = [{transform_indices = @transform_0, window_bounds = array<i64: 8, 32>}, {pipeline_mode = #tpu.pipeline_mode<synchronous>, transform_indices = @transform_1, window_bounds = array<i64: 32, 64>}, {pipeline_mode = #tpu.pipeline_mode<synchronous>, transform_indices = @transform_2, window_bounds = array<i64: 1, 64>}, {pipeline_mode = #tpu.pipeline_mode<synchronous>, transform_indices = @transform_3, window_bounds = array<i64: 1, 64>}, {pipeline_mode = #tpu.pipeline_mode<synchronous>, transform_indices = @transform_4, window_bounds = array<i64: 1, 64>}, {pipeline_mode = #tpu.pipeline_mode<synchronous>, transform_indices = @transform_5, window_bounds = array<i64: 64, 64>}, {pipeline_mode = #tpu.pipeline_mode<synchronous>, transform_indices = @transform_6, window_bounds = array<i64: 1, 64>}, {pipeline_mode = #tpu.pipeline_mode<synchronous>, transform_indices = @transform_7, window_bounds = array<i64: 1, 64>}, {pipeline_mode = #tpu.pipeline_mode<synchronous>, transform_indices = @transform_8, window_bounds = array<i64: 1, 64>}, {pipeline_mode = #tpu.pipeline_mode<synchronous>, transform_indices = @transform_9, window_bounds = array<i64: 64, 128>}, {pipeline_mode = #tpu.pipeline_mode<synchronous>, transform_indices = @transform_10, window_bounds = array<i64: 1, 128>}, {transform_indices = @transform_11, window_bounds = array<i64: 8, 128>}]} {
    %c0 = arith.constant 0 : index
    %c0_0 = arith.constant 0 : index
    %0 = vector.load %arg1[%c0, %c0_0] : memref<8x32xf32, #tpu.memory_space<vmem>>, vector<8x32xf32>
    %c0_1 = arith.constant 0 : index
    %c0_2 = arith.constant 0 : index
    %1 = vector.load %arg2[%c0_1, %c0_2] : memref<32x64xf32, #tpu.memory_space<vmem>>, vector<32x64xf32>
    %cst = arith.constant dense<0.000000e+00> : vector<8x64xf32>
    %2 = tpu.matmul %0, %1, %cst {dimension_numbers = #tpu.dot_dimension_numbers<[1], [0], [0], [1], [0, 0, 1, 1], [], []>} : vector<8x32xf32>, vector<32x64xf32>, vector<8x64xf32> -> vector<8x64xf32>
    %c0_3 = arith.constant 0 : index
    %c0_4 = arith.constant 0 : index
    %3 = vector.load %arg3[%c0_3, %c0_4] : memref<1x64xf32, #tpu.memory_space<vmem>>, vector<1x64xf32>
    %4 = vector.broadcast %3 : vector<1x64xf32> to vector<8x64xf32>
    %5 = arith.addf %2, %4 : vector<8x64xf32>
    %cst_5 = arith.constant 0.000000e+00 : f32
    %6 = vector.broadcast %cst_5 : f32 to vector<8x64xf32>
    %7 = arith.cmpf ogt, %5, %6 : vector<8x64xf32>
    %cst_6 = arith.constant 0.000000e+00 : f32
    %8 = vector.broadcast %cst_6 : f32 to vector<8x64xf32>
    %9 = arith.minimumf %5, %8 : vector<8x64xf32>
    %10 = math.exp %9 : vector<8x64xf32>
    %cst_7 = arith.constant 1.000000e+00 : f32
    %11 = vector.broadcast %cst_7 : f32 to vector<8x64xf32>
    %12 = arith.subf %10, %11 : vector<8x64xf32>
    %13 = arith.select %7, %5, %12 : vector<8x64xi1>, vector<8x64xf32>
    %cst_8 = arith.constant dense<0.000000e+00> : vector<8xf32>
    %14 = vector.multi_reduction <add>, %13, %cst_8 [1] : vector<8x64xf32> to vector<8xf32>
    %15 = vector.shape_cast %14 : vector<8xf32> to vector<8x1xf32>
    %16 = arith.mulf %13, %13 : vector<8x64xf32>
    %cst_9 = arith.constant dense<0.000000e+00> : vector<8xf32>
    %17 = vector.multi_reduction <add>, %16, %cst_9 [1] : vector<8x64xf32> to vector<8xf32>
    %18 = vector.shape_cast %17 : vector<8xf32> to vector<8x1xf32>
    %cst_10 = arith.constant 1.562500e-02 : f32
    %19 = vector.broadcast %cst_10 : f32 to vector<8x1xf32>
    %20 = arith.mulf %15, %19 : vector<8x1xf32>
    %cst_11 = arith.constant 1.562500e-02 : f32
    %21 = vector.broadcast %cst_11 : f32 to vector<8x1xf32>
    %22 = arith.mulf %18, %21 : vector<8x1xf32>
    %23 = arith.mulf %20, %20 : vector<8x1xf32>
    %24 = arith.subf %22, %23 : vector<8x1xf32>
    %cst_12 = arith.constant 0.000000e+00 : f32
    %25 = vector.broadcast %cst_12 : f32 to vector<8x1xf32>
    %26 = arith.maximumf %24, %25 : vector<8x1xf32>
    %cst_13 = arith.constant 9.99999974E-6 : f32
    %27 = vector.broadcast %cst_13 : f32 to vector<8x1xf32>
    %28 = arith.addf %26, %27 : vector<8x1xf32>
    %29 = math.rsqrt %28 : vector<8x1xf32>
    %30 = vector.broadcast %20 : vector<8x1xf32> to vector<8x64xf32>
    %31 = arith.subf %13, %30 : vector<8x64xf32>
    %c0_14 = arith.constant 0 : index
    %c0_15 = arith.constant 0 : index
    %32 = vector.load %arg4[%c0_14, %c0_15] : memref<1x64xf32, #tpu.memory_space<vmem>>, vector<1x64xf32>
    %33 = vector.broadcast %29 : vector<8x1xf32> to vector<8x64xf32>
    %34 = vector.broadcast %32 : vector<1x64xf32> to vector<8x64xf32>
    %35 = arith.mulf %33, %34 : vector<8x64xf32>
    %36 = arith.mulf %31, %35 : vector<8x64xf32>
    %c0_16 = arith.constant 0 : index
    %c0_17 = arith.constant 0 : index
    %37 = vector.load %arg5[%c0_16, %c0_17] : memref<1x64xf32, #tpu.memory_space<vmem>>, vector<1x64xf32>
    %38 = vector.broadcast %37 : vector<1x64xf32> to vector<8x64xf32>
    %39 = arith.addf %36, %38 : vector<8x64xf32>
    %c0_18 = arith.constant 0 : index
    %c0_19 = arith.constant 0 : index
    %40 = vector.load %arg6[%c0_18, %c0_19] : memref<64x64xf32, #tpu.memory_space<vmem>>, vector<64x64xf32>
    %cst_20 = arith.constant dense<0.000000e+00> : vector<8x64xf32>
    %41 = tpu.matmul %39, %40, %cst_20 {dimension_numbers = #tpu.dot_dimension_numbers<[1], [0], [0], [1], [0, 0, 1, 1], [], []>} : vector<8x64xf32>, vector<64x64xf32>, vector<8x64xf32> -> vector<8x64xf32>
    %c0_21 = arith.constant 0 : index
    %c0_22 = arith.constant 0 : index
    %42 = vector.load %arg7[%c0_21, %c0_22] : memref<1x64xf32, #tpu.memory_space<vmem>>, vector<1x64xf32>
    %43 = vector.broadcast %42 : vector<1x64xf32> to vector<8x64xf32>
    %44 = arith.addf %41, %43 : vector<8x64xf32>
    %cst_23 = arith.constant 0.000000e+00 : f32
    %45 = vector.broadcast %cst_23 : f32 to vector<8x64xf32>
    %46 = arith.cmpf ogt, %44, %45 : vector<8x64xf32>
    %cst_24 = arith.constant 0.000000e+00 : f32
    %47 = vector.broadcast %cst_24 : f32 to vector<8x64xf32>
    %48 = arith.minimumf %44, %47 : vector<8x64xf32>
    %49 = math.exp %48 : vector<8x64xf32>
    %cst_25 = arith.constant 1.000000e+00 : f32
    %50 = vector.broadcast %cst_25 : f32 to vector<8x64xf32>
    %51 = arith.subf %49, %50 : vector<8x64xf32>
    %52 = arith.select %46, %44, %51 : vector<8x64xi1>, vector<8x64xf32>
    %cst_26 = arith.constant dense<0.000000e+00> : vector<8xf32>
    %53 = vector.multi_reduction <add>, %52, %cst_26 [1] : vector<8x64xf32> to vector<8xf32>
    %54 = vector.shape_cast %53 : vector<8xf32> to vector<8x1xf32>
    %55 = arith.mulf %52, %52 : vector<8x64xf32>
    %cst_27 = arith.constant dense<0.000000e+00> : vector<8xf32>
    %56 = vector.multi_reduction <add>, %55, %cst_27 [1] : vector<8x64xf32> to vector<8xf32>
    %57 = vector.shape_cast %56 : vector<8xf32> to vector<8x1xf32>
    %cst_28 = arith.constant 1.562500e-02 : f32
    %58 = vector.broadcast %cst_28 : f32 to vector<8x1xf32>
    %59 = arith.mulf %54, %58 : vector<8x1xf32>
    %cst_29 = arith.constant 1.562500e-02 : f32
    %60 = vector.broadcast %cst_29 : f32 to vector<8x1xf32>
    %61 = arith.mulf %57, %60 : vector<8x1xf32>
    %62 = arith.mulf %59, %59 : vector<8x1xf32>
    %63 = arith.subf %61, %62 : vector<8x1xf32>
    %cst_30 = arith.constant 0.000000e+00 : f32
    %64 = vector.broadcast %cst_30 : f32 to vector<8x1xf32>
    %65 = arith.maximumf %63, %64 : vector<8x1xf32>
    %cst_31 = arith.constant 9.99999974E-6 : f32
    %66 = vector.broadcast %cst_31 : f32 to vector<8x1xf32>
    %67 = arith.addf %65, %66 : vector<8x1xf32>
    %68 = math.rsqrt %67 : vector<8x1xf32>
    %69 = vector.broadcast %59 : vector<8x1xf32> to vector<8x64xf32>
    %70 = arith.subf %52, %69 : vector<8x64xf32>
    %c0_32 = arith.constant 0 : index
    %c0_33 = arith.constant 0 : index
    %71 = vector.load %arg8[%c0_32, %c0_33] : memref<1x64xf32, #tpu.memory_space<vmem>>, vector<1x64xf32>
    %72 = vector.broadcast %68 : vector<8x1xf32> to vector<8x64xf32>
    %73 = vector.broadcast %71 : vector<1x64xf32> to vector<8x64xf32>
    %74 = arith.mulf %72, %73 : vector<8x64xf32>
    %75 = arith.mulf %70, %74 : vector<8x64xf32>
    %c0_34 = arith.constant 0 : index
    %c0_35 = arith.constant 0 : index
    %76 = vector.load %arg9[%c0_34, %c0_35] : memref<1x64xf32, #tpu.memory_space<vmem>>, vector<1x64xf32>
    %77 = vector.broadcast %76 : vector<1x64xf32> to vector<8x64xf32>
    %78 = arith.addf %75, %77 : vector<8x64xf32>
    %c0_36 = arith.constant 0 : index
    %c0_37 = arith.constant 0 : index
    %79 = vector.load %arg10[%c0_36, %c0_37] : memref<64x128xf32, #tpu.memory_space<vmem>>, vector<64x128xf32>
    %cst_38 = arith.constant dense<0.000000e+00> : vector<8x128xf32>
    %80 = tpu.matmul %78, %79, %cst_38 {dimension_numbers = #tpu.dot_dimension_numbers<[1], [0], [0], [1], [0, 0, 1, 1], [], []>} : vector<8x64xf32>, vector<64x128xf32>, vector<8x128xf32> -> vector<8x128xf32>
    %c0_39 = arith.constant 0 : index
    %c0_40 = arith.constant 0 : index
    %81 = vector.load %arg11[%c0_39, %c0_40] : memref<1x128xf32, #tpu.memory_space<vmem>>, vector<1x128xf32>
    %82 = vector.broadcast %81 : vector<1x128xf32> to vector<8x128xf32>
    %83 = arith.addf %80, %82 : vector<8x128xf32>
    %c0_41 = arith.constant 0 : index
    %c0_42 = arith.constant 0 : index
    %84 = vector.load %arg12[%c0_41, %c0_42] : memref<8x128xf32, #tpu.memory_space<vmem>>, vector<8x128xf32>
    tpu.vector_store %arg12[%c0_41, %c0_42], %83 {strides = array<i32>} : memref<8x128xf32, #tpu.memory_space<vmem>>, vector<8x128xf32>,
    return
  }
  func.func @transform_0(%arg0: i32) -> (i32, i32) {
    %c0_i32 = arith.constant 0 : i32
    %c0_i32_0 = arith.constant 0 : i32
    return %arg0, %c0_i32 : i32, i32
  }
  func.func @transform_1(%arg0: i32) -> (i32, i32) {
    %c0_i32 = arith.constant 0 : i32
    %c0_i32_0 = arith.constant 0 : i32
    %c0_i32_1 = arith.constant 0 : i32
    return %c0_i32, %c0_i32_0 : i32, i32
  }
  func.func @transform_2(%arg0: i32) -> (i32, i32) {
    %c0_i32 = arith.constant 0 : i32
    %c0_i32_0 = arith.constant 0 : i32
    %c0_i32_1 = arith.constant 0 : i32
    return %c0_i32, %c0_i32_0 : i32, i32
  }
  func.func @transform_3(%arg0: i32) -> (i32, i32) {
    %c0_i32 = arith.constant 0 : i32
    %c0_i32_0 = arith.constant 0 : i32
    %c0_i32_1 = arith.constant 0 : i32
    return %c0_i32, %c0_i32_0 : i32, i32
  }
  func.func @transform_4(%arg0: i32) -> (i32, i32) {
    %c0_i32 = arith.constant 0 : i32
    %c0_i32_0 = arith.constant 0 : i32
    %c0_i32_1 = arith.constant 0 : i32
    return %c0_i32, %c0_i32_0 : i32, i32
  }
  func.func @transform_5(%arg0: i32) -> (i32, i32) {
    %c0_i32 = arith.constant 0 : i32
    %c0_i32_0 = arith.constant 0 : i32
    %c0_i32_1 = arith.constant 0 : i32
    return %c0_i32, %c0_i32_0 : i32, i32
  }
  func.func @transform_6(%arg0: i32) -> (i32, i32) {
    %c0_i32 = arith.constant 0 : i32
    %c0_i32_0 = arith.constant 0 : i32
    %c0_i32_1 = arith.constant 0 : i32
    return %c0_i32, %c0_i32_0 : i32, i32
  }
  func.func @transform_7(%arg0: i32) -> (i32, i32) {
    %c0_i32 = arith.constant 0 : i32
    %c0_i32_0 = arith.constant 0 : i32
    %c0_i32_1 = arith.constant 0 : i32
    return %c0_i32, %c0_i32_0 : i32, i32
  }
  func.func @transform_8(%arg0: i32) -> (i32, i32) {
    %c0_i32 = arith.constant 0 : i32
    %c0_i32_0 = arith.constant 0 : i32
    %c0_i32_1 = arith.constant 0 : i32
    return %c0_i32, %c0_i32_0 : i32, i32
  }
  func.func @transform_9(%arg0: i32) -> (i32, i32) {
    %c0_i32 = arith.constant 0 : i32
    %c0_i32_0 = arith.constant 0 : i32
    %c0_i32_1 = arith.constant 0 : i32
    return %c0_i32, %c0_i32_0 : i32, i32
  }
  func.func @transform_10(%arg0: i32) -> (i32, i32) {
    %c0_i32 = arith.constant 0 : i32
    %c0_i32_0 = arith.constant 0 : i32
    %c0_i32_1 = arith.constant 0 : i32
    return %c0_i32, %c0_i32_0 : i32, i32
  }
  func.func @transform_11(%arg0: i32) -> (i32, i32) {
    %c0_i32 = arith.constant 0 : i32
    %c0_i32_0 = arith.constant 0 : i32
    return %arg0, %c0_i32 : i32, i32
  }
}

</mosaic_0001>

<bundles_post_ra>
// kernel: actor_forward.1
= control target key start
LH: loop header
LB: loop body
LE: loop exit
PB: predicated region body
PF: predicated region fallthrough
CT: control target
= control target key end

     0   :  { %s443_s0 = inlined_call_operand.vmem [shape: f32[8,32], index: 0, kind: input, shape index: {}]   ;;  %s444_s1 = inlined_call_operand.vmem [shape: f32[32,64], index: 1, kind: input, shape index: {}]   ;;  %s445_s2 = inlined_call_operand.vmem [shape: f32[1,64], index: 2, kind: input, shape index: {}]   ;;  %s446_s3 = inlined_call_operand.vmem [shape: f32[1,64], index: 3, kind: input, shape index: {}]   ;;  %s447_s4 = inlined_call_operand.vmem [shape: f32[1,64], index: 4, kind: input, shape index: {}]   ;;  %s448_s5 = inlined_call_operand.vmem [shape: f32[64,64], index: 5, kind: input, shape index: {}]   ;;  %s449_s6 = inlined_call_operand.vmem [shape: f32[1,64], index: 6, kind: input, shape index: {}]   ;;  %s450_s7 = inlined_call_operand.vmem [shape: f32[1,64], index: 7, kind: input, shape index: {}]   ;;  %s451_s8 = inlined_call_operand.vmem [shape: f32[1,64], index: 8, kind: input, shape index: {}]   ;;  %s452_s9 = inlined_call_operand.vmem [shape: f32[64,128], index: 9, kind: input, shape index: {}]   ;;  %s453_s10 = inlined_call_operand.vmem [shape: f32[1,128], index: 10, kind: input, shape index: {}]   ;;  %s454_s11 = inlined_call_operand.hbm [shape: f32[8,128], index: 11, kind: output, shape index: {}]  }
   0x1   :  { %v43_v0 = vld [vmem:[%s444_s1 + $0x18] sm:$0xff]  ;;  %v42_v1 = vld [vmem:[%s444_s1 + $0x10] sm:$0xff]  ;;  %v41_v2 = vld [vmem:[%s444_s1 + $0x8] sm:$0xff] }
   0x2   :  { %64 = vmatpush.msra.mxu0 %v43_v0  ;;  %v40_v3 = vld [vmem:[%s444_s1] sm:$0xff] }
   0x4   :  { %65 = vmatpush.msra.mxu0 %v42_v1 }
   0x5   :  { %16 = vsyncpa [#allocation3], 0  ;;  %v39_v4 = vld [vmem:[%s443_s0] sm:$0xff]  ;;  %vm48_vm0 = vcmask 261120   ;;  %vm78_vm1 = vcmask 523264   ;;  %v121_v16 = vld [vmem:[%s448_s5 + $0x38] sm:$0xff] }
   0x6   :  { %66 = vmatpush.msra.mxu0 %v41_v2  ;;  %v248_v5 = vld [vmem:[%s445_s2] ss:$0 sm:$0xff]  ;;  %137 = vmatpush.msra.mxu1 %v121_v16  ;;  %v120_v17 = vld [vmem:[%s448_s5 + $0x30] sm:$0xff]  ;;  %v119_v18 = vld [vmem:[%s448_s5 + $0x28] sm:$0xff]  ;;  %s289_s24 = smov [#allocation2]   ;;  %s233_s26 = sshll.u32 %s454_s11, 4  ;;  %s234_s26 = int_to_ptr.hbm [resolvable:$true] %s233_s26 }
   0x7   :  { %v118_v19 = vld [vmem:[%s448_s5 + $0x20] sm:$0xff]  ;;  %v117_v21 = vld [vmem:[%s448_s5 + $0x18] sm:$0xff]  ;;  %v116_v22 = vld [vmem:[%s448_s5 + $0x10] sm:$0xff] }
   0x8   :  { %67 = vmatpush.msra.mxu0 %v40_v3  ;;  %138 = vmatpush.msra.mxu1 %v120_v17  ;;  %v115_v23 = vld [vmem:[%s448_s5 + $0x8] sm:$0xff]  ;;  %v114_v25 = vld [vmem:[%s448_s5] sm:$0xff]  ;;  %v197_v56 = vld [vmem:[%s452_s9 + $0x38] sm:$0xff] }
   0x9   :  { %242 = vmatmul.msk.f32.vlgmr.msra.gmra.mxu0 %vm48_vm0, %v39_v4  ;;  %v249_v37 = vld [vmem:[%s446_s3] ss:$0 sm:$0xff]  ;;  %213 = vmatpush.msra.mxu2 %v197_v56  ;;  %v196_v57 = vld [vmem:[%s452_s9 + $0x30] sm:$0xff]  ;;  %v195_v58 = vld [vmem:[%s452_s9 + $0x28] sm:$0xff] }
   0xa   :  { %139 = vmatpush.msra.mxu1 %v119_v18  ;;  %v250_v42 = vld [vmem:[%s447_s4] ss:$0 sm:$0xff]  ;;  %v193_v61 = vld [vmem:[%s452_s9 + $0x18] sm:$0xff]  ;;  %v192_v62 = vld [vmem:[%s452_s9 + $0x10] sm:$0xff] }
   0xb   :  { %v251_v45 = vld [vmem:[%s449_s6] ss:$0 sm:$0xff]  ;;  %214 = vmatpush.msra.mxu2 %v196_v57  ;;  %v191_v63 = vld [vmem:[%s452_s9 + $0x8] sm:$0xff] }
   0xc   :  { %140 = vmatpush.msra.mxu1 %v118_v19  ;;  %v194_v59 = vld [vmem:[%s452_s9 + $0x20] sm:$0xff] }
   0xd   :  { %215 = vmatpush.msra.mxu2 %v195_v58  ;;  %v190_v1 = vld [vmem:[%s452_s9] sm:$0xff] }
   0xe   :  { %141 = vmatpush.msra.mxu1 %v117_v21  ;;  %v253_v18 = vld [vmem:[%s451_s8] ss:$0 sm:$0xff] }
   0xf   :  { %216 = vmatpush.msra.mxu2 %v194_v59  ;;  %v254_v21 = vld [vmem:[%s453_s10] ss:$0 sm:$0xff] }
  0x10   :  { %142 = vmatpush.msra.mxu1 %v116_v22 }
  0x11   :  { %217 = vmatpush.msra.mxu2 %v193_v61 }
  0x12   :  { %143 = vmatpush.msra.mxu1 %v115_v23 }
  0x13   :  { %218 = vmatpush.msra.mxu2 %v192_v62 }
  0x14   :  { %144 = vmatpush.msra.mxu1 %v114_v25 }
  0x15   :  { %219 = vmatpush.msra.mxu2 %v191_v63 }
  0x17   :  { %220 = vmatpush.msra.mxu2 %v190_v1 }
  0x86   :  { %v69_v6 = vpop.f32.mrf.mxu0 }
  0x87   :  { %v70_v7 = vadd.f32 %v248_v5, %v69_v6 }
  0x89   :  { %v73_v8 = vmin.f32 %v70_v7, 0.0  ;;  %vm72_vm2 = vcmp.gt.f32.partialorder %v70_v7, 0.0 }
  0x8b   :  { %v74_v9 = vmul.f32 1.442695, %v73_v8 }
  0x8d   :  { %255 = vpow2.f32 %v74_v9 }
  0x93   :  { %v256_v10 = vpop.eup %255 }
  0x94   :  { %v243_v11 = vadd.f32 -1.0, %v256_v10 }
  0x96   :  { %v77_v12 = vsel %vm72_vm2, %v70_v7, %v243_v11 }
  0x97   :  { %v79_v13 = vsel %vm78_vm1, %v77_v12, 0.0  ;;  %v82_v14 = vmul.f32 %v77_v12, %v77_v12 }
  0x98   :  { %80 = vadd.xlane.f32.xlu0 %v79_v13  ;;  %v252_v13 = vld [vmem:[%s450_s7] ss:$0 sm:$0xff]  ;;  %s231_s7 = sshll.u32 %s289_s24, 4  ;;  %s232_s7 = int_to_ptr.vmem [resolvable:$true] %s231_s7 }
  0x99   :  { %v83_v15 = vsel %vm78_vm1, %v82_v14, 0.0 }
  0xa0   :  { %84 = vadd.xlane.f32.xlu0 %v83_v15 }
 0x10b   :  { %v81_v20 = vpop.xlane.xlu0 %80 }
 0x10c   :  { %v86_v24 = vmul.f32 0.015625, %v81_v20 }
 0x10e   :  { %v88_v27 = vmul.f32 %v86_v24, %v86_v24  ;;  %v102_v40 = vsub.f32 %v77_v12, %v86_v24 }
 0x113   :  { %v85_v26 = vpop.xlane.xlu0 %84 }
 0x114   :  { %v87_v28 = vmul.f32 0.015625, %v85_v26 }
 0x116   :  { %v89_v29 = vsub.f32 %v87_v28, %v88_v27 }
 0x118   :  { %v90_v30 = vmax.f32 %v89_v29, 0.0 }
 0x11a   :  { %v91_v31 = vadd.f32 1e-05, %v90_v30 }
 0x11c   :  { %257 = vrsqrt.f32 %v91_v31  ;;  %vm98_vm4 = vweird.f32 %v91_v31 }
 0x122   :  { %v258_v32 = vpop.eup %257 }
 0x123   :  { %v93_v33 = vmul.f32 %v258_v32, %v91_v31  ;;  %vm99_vm3 = vweird.f32 %v258_v32 }
 0x124   :  { %vm100_vm5 = vmor %vm98_vm4, %vm99_vm3 }
 0x125   :  { %v94_v34 = vmul.f32 %v258_v32, %v93_v33 }
 0x127   :  { %v95_v35 = vmul.f32 0.5, %v94_v34 }
 0x129   :  { %v96_v36 = vsub.f32 1.5, %v95_v35 }
 0x12b   :  { %v97_v38 = vmul.f32 %v258_v32, %v96_v36 }
 0x12d   :  { %v101_v39 = vsel %vm100_vm5, %v258_v32, %v97_v38 }
 0x12e   :  { %v107_v41 = vmul.f32 %v249_v37, %v101_v39 }
 0x130   :  { %v108_v43 = vmul.f32 %v107_v41, %v102_v40 }
 0x132   :  { %v113_v44 = vadd.f32 %v250_v42, %v108_v43 }
 0x134   :  { %244 = vmatmul.msk.f32.vlgmr.msra.gmra.mxu1 %vm78_vm1, %v113_v44 }
 0x1b1   :  { %v146_v46 = vpop.f32.mrf.mxu1 }
 0x1b2   :  { %v147_v47 = vadd.f32 %v251_v45, %v146_v46 }
 0x1b4   :  { %v150_v48 = vmin.f32 %v147_v47, 0.0  ;;  %vm149_vm6 = vcmp.gt.f32.partialorder %v147_v47, 0.0 }
 0x1b6   :  { %v151_v49 = vmul.f32 1.442695, %v150_v48 }
 0x1b8   :  { %259 = vpow2.f32 %v151_v49 }
 0x1be   :  { %v260_v50 = vpop.eup %259 }
 0x1bf   :  { %v245_v51 = vadd.f32 -1.0, %v260_v50 }
 0x1c1   :  { %v154_v52 = vsel %vm149_vm6, %v147_v47, %v245_v51 }
 0x1c2   :  { %v155_v53 = vsel %vm78_vm1, %v154_v52, 0.0  ;;  %v158_v54 = vmul.f32 %v154_v52, %v154_v52 }
 0x1c3   :  { %156 = vadd.xlane.f32.xlu1 %v155_v53 }
 0x1c4   :  { %v159_v55 = vsel %vm78_vm1, %v158_v54, 0.0 }
 0x1cb   :  { %160 = vadd.xlane.f32.xlu1 %v159_v55 }
 0x236   :  { %v157_v60 = vpop.xlane.xlu1 %156 }
 0x237   :  { %v162_v0 = vmul.f32 0.015625, %v157_v60 }
 0x239   :  { %v164_v3 = vmul.f32 %v162_v0, %v162_v0  ;;  %v178_v16 = vsub.f32 %v154_v52, %v162_v0 }
 0x23e   :  { %v161_v2 = vpop.xlane.xlu1 %160 }
 0x23f   :  { %v163_v4 = vmul.f32 0.015625, %v161_v2 }
 0x241   :  { %v165_v5 = vsub.f32 %v163_v4, %v164_v3 }
 0x243   :  { %v166_v6 = vmax.f32 %v165_v5, 0.0 }
 0x245   :  { %v167_v7 = vadd.f32 1e-05, %v166_v6 }
 0x247   :  { %261 = vrsqrt.f32 %v167_v7  ;;  %vm174_vm8 = vweird.f32 %v167_v7 }
 0x24d   :  { %v262_v8 = vpop.eup %261 }
 0x24e   :  { %v169_v9 = vmul.f32 %v262_v8, %v167_v7  ;;  %vm175_vm7 = vweird.f32 %v262_v8 }
 0x24f   :  { %vm176_vm9 = vmor %vm174_vm8, %vm175_vm7 }
 0x250   :  { %v170_v10 = vmul.f32 %v262_v8, %v169_v9 }
 0x252   :  { %v171_v11 = vmul.f32 0.5, %v170_v10 }
 0x254   :  { %v172_v12 = vsub.f32 1.5, %v171_v11 }
 0x256   :  { %v173_v14 = vmul.f32 %v262_v8, %v172_v12 }
 0x258   :  { %v177_v15 = vsel %vm176_vm9, %v262_v8, %v173_v14 }
 0x259   :  { %v183_v17 = vmul.f32 %v252_v13, %v177_v15 }
 0x25b   :  { %v184_v19 = vmul.f32 %v183_v17, %v178_v16 }
 0x25d   :  { %v189_v20 = vadd.f32 %v253_v18, %v184_v19 }
 0x25f   :  { %246 = vmatmul.msk.f32.vlgmr.msra.gmra.mxu2 %vm78_vm1, %v189_v20 }
 0x2e2   :  { %v222_v22 = vpop.f32.mrf.mxu2 }
 0x2e3   :  { %v223_v23 = vadd.f32 %v254_v21, %v222_v22 }
 0x2e5   :  { %225 = vst [vmem:[#allocation2] sm:$0xff] %v223_v23 }
 0x2e6   :  { %236 = dma.vmem_to_hbm [thread:$0]  %s232_s7, 128, %s234_s26, [#allocation3]  }
 0x2e7   :  { %287 = dma.done.wait [#allocation3], 128  }
 0x2e8   :  { %288 = vsyncadd [#allocation3], 4294967168 }
 0x2e9   :  { %241 = vsyncpa [#allocation3], 1 }

</bundles_post_ra>
